<compile_context>
chip_gen: v7x
topology: tpu7x:2x2x1
jax: 0.10.0
libtpu: 0.0.40
codegen_flags: <defaults>
</compile_context>

<pallas_src>
import math

import jax
import jax.numpy as jnp
from jax.experimental import pallas as pl
from jax.experimental.pallas import tpu as pltpu


def _learnable_vec_kernel(w_ref, x_ref, o_ref):
    # w_ref: (1, C) row, resident across the grid (constant block index).
    # x_ref / o_ref: (tm, C) tiles. (1, C) * (tm, C) sublane-broadcasts on the VPU.
    o_ref[...] = x_ref[...].astype(o_ref.dtype) * w_ref[...]


def _chip_params():
    """Generation-aware tiling / VMEM parameters."""
    kind = ""
    try:
        kind = jax.devices()[0].device_kind.lower()
    except Exception:
        pass
    vmem_cap = None
    try:
        vmem_cap = int(pltpu.get_tpu_info().vmem_capacity_bytes)
    except Exception:
        pass
    if "v7" in kind or "7x" in kind:
        return dict(target_tile_bytes=7 << 20, min_steps=8,
                    floor_tile_bytes=512 << 10, fastpath_bytes=1536 << 10,
                    vmem_cap=vmem_cap or (64 << 20))
    if "v6" in kind:
        return dict(target_tile_bytes=4 << 20, min_steps=3,
                    floor_tile_bytes=1 << 20, fastpath_bytes=768 << 10,
                    vmem_cap=vmem_cap or (128 << 20))
    # v5e / older / unknown
    return dict(target_tile_bytes=2 << 20, min_steps=3,
                floor_tile_bytes=1 << 20, fastpath_bytes=256 << 10,
                vmem_cap=vmem_cap or (128 << 20))


def _choose_fold(M, n, itemsize, target_lanes=1024):
    """Pick k dividing M so the folded lane width C = k*n is as lane-dense as possible."""
    if M <= 0 or n <= 0:
        return 1
    need = 128 // math.gcd(n, 128)          # smallest k making (k*n) % 128 == 0

    def widen(k):
        # widen toward ~target_lanes while keeping >=8 folded rows (sublane density)
        while (k * n) < target_lanes and M % (2 * k) == 0 and M // (2 * k) >= 8:
            k *= 2
        return k

    if M % need == 0:
        return widen(need)

    # Exact lane fit impossible without an HBM copy: pick the divisor of M with
    # the best lane utilization instead of collapsing back to lane width n.
    def util(c):
        return c / (128.0 * ((c + 127) // 128))

    best_k, best_u = 1, util(n)
    k_cap = max(1, (256 << 10) // max(1, n * itemsize))   # keep the W row <= ~256 KiB
    for k in range(2, min(M, k_cap) + 1):
        if M // k < 8:                       # keep >=8 folded rows
            break
        if M % k:
            continue
        u = util(k * n)
        if u > best_u + 1e-12:
            best_k, best_u = k, u
    return best_k


def _auto_tm(Mk, in_row_bytes, io_row_bytes, sub, p):
    """Row-tile size: large tiles, bounded grid-step count, VMEM-safe."""
    tm = max(1, p["target_tile_bytes"] // in_row_bytes)
    # Keep >= min_steps grid steps (megacore on v7x, pipelining elsewhere), but
    # never shrink a tile below the per-chip floor (~0.5-1 MiB).
    steps_cap = pl.cdiv(Mk, p["min_steps"])
    floor_tm = max(1, p["floor_tile_bytes"] // in_row_bytes)
    tm = min(tm, max(steps_cap, floor_tm))
    # Double-buffered x + out tiles must fit comfortably inside VMEM.
    tm = min(tm, max(1, int(0.70 * p["vmem_cap"]) // (2 * io_row_bytes)))
    if tm >= Mk:
        return Mk
    tm = max(sub, (tm // sub) * sub)
    return min(tm, Mk)


def learnable_vec_forward(w, x, *, force_pallas=False, tm=None, buffering=None):
    """Computes W * x with W of shape (n,) broadcast over x's last dimension."""
    assert w.ndim == 1, "W must be a 1-D parameter vector"
    n = w.shape[-1]
    assert x.shape[-1] == n, "last dim of x must equal len(W)"
    orig_shape = x.shape

    # Match PyTorch promotion semantics of `self.W * x` (e.g. f32 * bf16 -> f32).
    out_dtype = jnp.promote_types(w.dtype, x.dtype)
    x_item = jnp.dtype(x.dtype).itemsize
    out_item = jnp.dtype(out_dtype).itemsize
    p = _chip_params()

    if x.size == 0:
        return (w.astype(out_dtype) * x.astype(out_dtype)).reshape(orig_shape)

    # Fast path: for small tensors the pallas_call boundary + pipeline prologue
    # dwarfs the (sub-microsecond) streaming work; XLA's fused elementwise wins.
    if not force_pallas and x.size * x_item < p["fastpath_bytes"]:
        return (w.astype(out_dtype) * x).reshape(orig_shape)

    M = x.size // n

    # Lane folding: view the contiguous (M, n) slab as (Mk, C) with C lane-dense,
    # and tile W to match the row-major flattening order.
    k = _choose_fold(M, n, x_item)
    C = k * n
    Mk = M // k
    x2d = x.reshape(Mk, C)                                   # contiguous, no HBM copy
    w_vec = w.astype(out_dtype)
    w_row = (jnp.tile(w_vec, k) if k > 1 else w_vec).reshape(1, C)

    in_row = C * x_item
    out_row = C * out_item
    io_row = in_row + out_row
    sub = max(8, 32 // x_item, 32 // out_item)               # sublane multiple per dtype

    if tm is None:
        tm = _auto_tm(Mk, in_row, io_row, sub, p)
    else:
        assert tm == Mk or tm % 8 == 0, "explicit tm must be Mk or a multiple of 8"
        vmem_tm_cap = max(1, int(0.70 * p["vmem_cap"]) // (2 * io_row))
        if tm > vmem_tm_cap and vmem_tm_cap < Mk:
            tm = max(8, (vmem_tm_cap // 8) * 8)
        tm = min(tm, Mk)

    grid = (pl.cdiv(Mk, tm),)                                # ragged tail handled by Pallas

    # VMEM budget: double-buffered x + out tiles, resident W row, small slack.
    est_vmem = 2 * tm * io_row + 4 * out_row + (2 << 20)
    vmem_limit = int(min(max(est_vmem, 16 << 20), int(0.75 * p["vmem_cap"])))

    # Optional deeper pipelining (sweep on v7x only if xprof shows exposed DMA).
    pm = {} if buffering is None else {"pipeline_mode": pl.Buffered(int(buffering))}
    w_spec = pl.BlockSpec((1, C), lambda i: (0, 0))          # resident W row
    x_spec = pl.BlockSpec((tm, C), lambda i: (i, 0), **pm)
    o_spec = pl.BlockSpec((tm, C), lambda i: (i, 0), **pm)

    out = pl.pallas_call(
        _learnable_vec_kernel,
        out_shape=jax.ShapeDtypeStruct((Mk, C), out_dtype),
        grid_spec=pltpu.PrefetchScalarGridSpec(
            num_scalar_prefetch=0,
            grid=grid,
            in_specs=[w_spec, x_spec],
            out_specs=o_spec,
        ),
        compiler_params=pltpu.CompilerParams(
            # "parallel" allows megacore sharding of the grid on v7x.
            # TODO(synk): verify in xprof that both v7x TensorCores run the grid;
            # if not, switch this axis to pltpu.CORE_PARALLEL (or a core_map split).
            dimension_semantics=("parallel",),
            vmem_limit_bytes=vmem_limit,
        ),
    )(w_row, x2d)

    return out.reshape(orig_shape)


if __name__ == "__main__":
    key = jax.random.PRNGKey(0)
    k_w, k_x, k_w2, k_x2, k_w3, k_x3 = jax.random.split(key, 6)

    # Case 1: the module's natural small shape (batch=2, seq=8, hidden=32).
    # force_pallas=True so the kernel path (not the tiny-input fast path) runs.
    n = 32
    W = jax.random.normal(k_w, (n,), dtype=jnp.float32)      # torch.randn(n) analog
    x = jax.random.normal(k_x, (2, 8, n), dtype=jnp.float32)
    y = jax.block_until_ready(learnable_vec_forward(W, x, force_pallas=True))
    ref = W * x
    assert y.shape == x.shape and y.dtype == ref.dtype
    assert jnp.allclose(y, ref, atol=1e-6, rtol=1e-6)

    # Case 2: exact lane folding (k=16 -> C=384), multi-step grid and a ragged
    # final block (Mk=25 rows, tm=8 -> grid of 4, partial last tile).
    n2 = 24
    W2 = jax.random.normal(k_w2, (n2,), dtype=jnp.float32)
    x2 = jax.random.normal(k_x2, (4, 100, n2), dtype=jnp.float32)
    y2 = jax.block_until_ready(
        learnable_vec_forward(W2, x2, force_pallas=True, tm=8))
    ref2 = W2 * x2
    assert y2.shape == x2.shape and y2.dtype == ref2.dtype
    assert jnp.allclose(y2, ref2, atol=1e-6, rtol=1e-6)

    # Case 3: n not a divisor-friendly width (n=33, M=120 not divisible by the
    # exact-fit fold factor 128) -> exercises the graceful-degradation fold
    # (best divisor of M, here k=15 -> C=495, ~97% lane utilization).
    n3 = 33
    W3 = jax.random.normal(k_w3, (n3,), dtype=jnp.float32)
    x3 = jax.random.normal(k_x3, (3, 40, n3), dtype=jnp.float32)
    y3 = jax.block_until_ready(learnable_vec_forward(W3, x3, force_pallas=True))
    ref3 = W3 * x3
    assert y3.shape == x3.shape and y3.dtype == ref3.dtype
    assert jnp.allclose(y3, ref3, atol=1e-6, rtol=1e-6)

    print("KERNEL_OK")
</pallas_src>

<mosaic_0001>
module attributes {stable_mosaic.version = 11 : i64} {
  func.func @_learnable_vec_kernel(%arg0: i32, %arg1: memref<1x128xf32, #tpu.memory_space<vmem>>, %arg2: memref<4x128xf32, #tpu.memory_space<vmem>>, %arg3: memref<4x128xf32, #tpu.memory_space<vmem>>) attributes {dimension_semantics = [#tpu.dimension_semantics<parallel>], iteration_bounds = array<i64: 1>, scalar_prefetch = 0 : i64, scratch_operands = 0 : i64, tpu.core_type = #tpu.core_type<tc>, window_params = [{pipeline_mode = #tpu.pipeline_mode<synchronous>, transform_indices = @transform_0, window_bounds = array<i64: 1, 128>}, {transform_indices = @transform_1, window_bounds = array<i64: 4, 128>}, {transform_indices = @transform_2, window_bounds = array<i64: 4, 128>}]} {
    %c0 = arith.constant 0 : index
    %c0_0 = arith.constant 0 : index
    %0 = vector.load %arg2[%c0, %c0_0] : memref<4x128xf32, #tpu.memory_space<vmem>>, vector<4x128xf32>
    %c0_1 = arith.constant 0 : index
    %c0_2 = arith.constant 0 : index
    %1 = vector.load %arg1[%c0_1, %c0_2] : memref<1x128xf32, #tpu.memory_space<vmem>>, vector<1x128xf32>
    %2 = vector.broadcast %1 : vector<1x128xf32> to vector<4x128xf32>
    %3 = arith.mulf %0, %2 : vector<4x128xf32>
    %c0_3 = arith.constant 0 : index
    %c0_4 = arith.constant 0 : index
    %4 = vector.load %arg3[%c0_3, %c0_4] : memref<4x128xf32, #tpu.memory_space<vmem>>, vector<4x128xf32>
    tpu.vector_store %arg3[%c0_3, %c0_4], %3 {strides = array<i32>} : memref<4x128xf32, #tpu.memory_space<vmem>>, vector<4x128xf32>,
    return
  }
  func.func @transform_0(%arg0: i32) -> (i32, i32) {
    %c0_i32 = arith.constant 0 : i32
    %c0_i32_0 = arith.constant 0 : i32
    %c0_i32_1 = arith.constant 0 : i32
    return %c0_i32, %c0_i32_0 : i32, i32
  }
  func.func @transform_1(%arg0: i32) -> (i32, i32) {
    %c0_i32 = arith.constant 0 : i32
    %c0_i32_0 = arith.constant 0 : i32
    return %arg0, %c0_i32 : i32, i32
  }
  func.func @transform_2(%arg0: i32) -> (i32, i32) {
    %c0_i32 = arith.constant 0 : i32
    %c0_i32_0 = arith.constant 0 : i32
    return %arg0, %c0_i32 : i32, i32
  }
}

</mosaic_0001>

<bundles_post_ra>
// kernel: tpu_custom_call.1
= control target key start
LH: loop header
LB: loop body
LE: loop exit
PB: predicated region body
PF: predicated region fallthrough
CT: control target
= control target key end

     0   :  { %7 = vsyncpa [#allocation3], 0  ;;  %s192_s0 = inlined_call_operand.hbm [shape: f32[1,128], index: 0, kind: input, shape index: {}]   ;;  %s193_s1 = inlined_call_operand.hbm [shape: f32[4,128], index: 1, kind: input, shape index: {}]   ;;  %s194_s2 = inlined_call_operand.hbm [shape: f32[4,128], index: 2, kind: output, shape index: {}]  }
   0x1   :  { %8 = vsyncpa [#allocation6], 0 }
   0x2   :  { %9 = vsyncpa [#allocation4], 0  ;;  %s138_s9 = smov [#allocation2]   ;;  %s139_s11 = smov [#allocation5]  }
   0x3   :  { %s16_s10 = sshll.u32 %s138_s9, 4  ;;  %s26_s12 = sshll.u32 %s139_s11, 4  ;;  %s17_s10 = int_to_ptr.vmem [resolvable:$true] %s16_s10  ;;  %s27_s12 = int_to_ptr.vmem [resolvable:$true] %s26_s12 }
   0x4   :  { %s66_s15 = scalar_lea.hbm %s192_s0, 16 }
   0x5   :  { %p67_p0 = scmp.ne.s32.totalorder %s192_s0, %s66_s15  ;;  %p70_p1 = scmp.lt.u32.totalorder %s66_s15, %s192_s0 }
   0x7   :  { %p72_p2 = pnand %p70_p1, %p67_p0 }
   0x9   :  { %75 = shalt.err (!%p72_p2)
}
   0xa   :  { %s76_s20 = scalar_lea.vmem %s17_s10, 16  ;;  %s80_s21 = scalar_lea.vmem %s17_s10, 32 }
   0xb   :  { %p77_p3 = scmp.ne.s32.totalorder %s17_s10, %s76_s20  ;;  %p81_p4 = scmp.lt.s32.totalorder %s17_s10, %s17_s10 }
   0xc   :  { %p82_p5 = scmp.lt.s32.totalorder %s80_s21, %s76_s20 }
   0xe   :  { %p83_p6 = por %p82_p5, %p81_p4 }
  0x10   :  { %p84_p7 = pnand %p83_p6, %p77_p3 }
  0x12   :  { %87 = shalt.err (!%p84_p7)
}
  0x13   :  { %19 = dma.hbm_to_vmem [thread:$0]  %s192_s0, 16, %s17_s10, [#allocation3]  }
  0x14   :  { %s88_s26 = scalar_lea.hbm %s193_s1, 64 }
  0x15   :  { %p89_p8 = scmp.ne.s32.totalorder %s193_s1, %s88_s26  ;;  %p92_p9 = scmp.lt.u32.totalorder %s88_s26, %s193_s1 }
  0x17   :  { %p94_p10 = pnand %p92_p9, %p89_p8 }
  0x19   :  { %97 = shalt.err (!%p94_p10)
}
  0x1a   :  { %s98_s3 = scalar_lea.vmem %s27_s12, 64  ;;  %p103_p12 = scmp.lt.s32.totalorder %s27_s12, %s27_s12 }
  0x1b   :  { %p99_p11 = scmp.ne.s32.totalorder %s27_s12, %s98_s3  ;;  %p104_p13 = scmp.lt.s32.totalorder %s98_s3, %s98_s3 }
  0x1d   :  { %p105_p0 = por %p104_p13, %p103_p12 }
  0x1f   :  { %p106_p1 = pnand %p105_p0, %p99_p11 }
  0x21   :  { %109 = shalt.err (!%p106_p1)
}
  0x22   :  { %29 = dma.hbm_to_vmem [thread:$0]  %s193_s1, 64, %s27_s12, [#allocation6]  }
  0x23   :  { %132 = dma.done.wait [#allocation3], 16  }
  0x24   :  { %133 = vsyncadd [#allocation3], 4294967280 }
  0x25   :  { %134 = dma.done.wait [#allocation6], 64  }
  0x26   :  { %135 = vsyncadd [#allocation6], 4294967232  ;;  %s140_s5 = smov [#allocation7]   ;;  %v36_v0 = vld [vmem:[#allocation5] sm:$0xf] }
  0x27   :  { %s52_s6 = sshll.u32 %s140_s5, 4  ;;  %v62_v1 = vld [vmem:[#allocation2] ss:$0 sm:$0xff]  ;;  %s53_s6 = int_to_ptr.vmem [resolvable:$true] %s52_s6 }
  0x28   :  { %v44_v2 = vmul.f32 %v62_v1, %v36_v0  ;;  %s110_s7 = scalar_lea.vmem %s53_s6, 64  ;;  %p115_p3 = scmp.lt.s32.totalorder %s53_s6, %s53_s6 }
  0x29   :  { %p111_p2 = scmp.ne.s32.totalorder %s53_s6, %s110_s7  ;;  %p116_p4 = scmp.lt.s32.totalorder %s110_s7, %s110_s7 }
  0x2a   :  { %45 = vst [vmem:[#allocation7] sm:$0xf] %v44_v2 }
  0x2b   :  { %p117_p5 = por %p116_p4, %p115_p3 }
  0x2d   :  { %p118_p6 = pnand %p117_p5, %p111_p2 }
  0x2f   :  { %121 = shalt.err (!%p118_p6)
}
  0x30   :  { %s122_s9 = scalar_lea.hbm %s194_s2, 64 }
  0x31   :  { %p123_p7 = scmp.ne.s32.totalorder %s194_s2, %s122_s9  ;;  %p126_p8 = scmp.lt.u32.totalorder %s122_s9, %s194_s2 }
  0x33   :  { %p128_p9 = pnand %p126_p8, %p123_p7 }
  0x35   :  { %131 = shalt.err (!%p128_p9)
}
  0x36   :  { %55 = dma.vmem_to_hbm [thread:$0]  %s53_s6, 64, %s194_s2, [#allocation4]  }
  0x37   :  { %136 = dma.done.wait [#allocation4], 64  }
  0x38   :  { %137 = vsyncadd [#allocation4], 4294967232 }
  0x39   :  { %59 = vsyncpa [#allocation3], 1 }
  0x3a   :  { %60 = vsyncpa [#allocation6], 1 }
  0x3b   :  { %61 = vsyncpa [#allocation4], 1 }

</bundles_post_ra>
